<compile_context>
chip_gen: v5e
topology: v5e:2x2
jax: 0.10.0
libtpu: 0.0.40
codegen_flags: <defaults>
</compile_context>

<pallas_src>
import functools
import math

import jax
import jax.numpy as jnp
from jax.experimental import pallas as pl
from jax.experimental.pallas import tpu as pltpu

EPS = 1e-5
KW = 9     # conv kernel width
PAD = 4    # conv padding along W


def basic_block_kernel(x_ref, scale_ref, bias_ref, w_ref, cb_ref, o_ref, *, img_w):
    # x_ref:     (Cin,       TR)  activations: channels on sublanes, spatial on lanes
    # scale_ref: (Cin,        1)  gamma * rsqrt(var + eps)
    # bias_ref:  (Cin,        1)  beta - mean * scale
    # w_ref:     (KW, Cout, Cin)  conv weight, tap-major
    # cb_ref:    (Cout,       1)  conv bias
    # o_ref:     (Cin+Cout,  TR)  fused cat([x, conv_out]) output (lane-dense store)
    cin, tr = x_ref.shape
    cout = o_ref.shape[0] - cin

    x = x_ref[...].astype(jnp.float32)

    # BatchNorm (stats folded into affine in the wrapper) + ReLU — VPU work.
    xn = jnp.maximum(x * scale_ref[...] + bias_ref[...], 0.0)

    # w-position of each lane inside its length-img_w row (tiles are aligned to
    # a multiple of img_w, so local position mod W == global position mod W).
    w_idx = jax.lax.broadcasted_iota(jnp.int32, (1, tr), 1) % img_w

    # (1, 9) conv as 9 accumulated MXU dots; per-tap shift = XLU lane roll +
    # one-compare edge mask (zero padding along W).
    acc = jnp.zeros((cout, tr), jnp.float32)
    for k in range(KW):
        s = k - PAD                                   # tap offset along W
        if s == 0:
            tap = xn
        else:
            rolled = pltpu.roll(xn, shift=(-s) % tr, axis=1)   # rolled[p] = xn[p + s]
            if s > 0:
                valid = w_idx < (img_w - s)
            else:
                valid = w_idx >= (-s)
            tap = jnp.where(valid, rolled, 0.0)
        acc = acc + jnp.dot(w_ref[k], tap, preferred_element_type=jnp.float32)
    acc = acc + cb_ref[...]

    # Fused torch.cat([x, out], dim=1): one full-width store per tile.
    o_ref[...] = jnp.concatenate(
        [x.astype(o_ref.dtype), acc.astype(o_ref.dtype)], axis=0)


def _pick_tile(r, w, *, target_lanes=65536, min_steps=8):
    """Lane-tile size + padded R.

    Tile is a multiple of lcm(128, w) (lane alignment + whole image rows per
    tile), sized toward `target_lanes` so each grid step moves >= ~MiB of HBM
    traffic, but capped so large inputs still get >= min_steps grid steps for
    double buffering / v7x megacore. R is padded up to a multiple of the tile.
    """
    base = (128 * w) // math.gcd(128, w)
    steps_cap = (max(r // min_steps, base) // base) * base
    tile = max(base, min((target_lanes // base) * base, steps_cap))
    r_pad = pl.cdiv(r, tile) * tile
    return tile, r_pad


def basic_block_forward(x_nchw, gamma, beta, conv_w, conv_b):
    """BasicBlock.forward: cat([x, Conv(ReLU(BN(x)))], dim=1)."""
    n, cin, h, w = x_nchw.shape
    cout = conv_w.shape[0]
    r = n * h * w

    # channels -> sublanes; flattened (N,H,W) with W innermost -> lanes.
    # (If this block lives inside a network, keep this layout across layers so
    # the transposes amortize to the network boundary.)
    x_cr = jnp.transpose(x_nchw.astype(jnp.float32), (1, 0, 2, 3)).reshape(cin, r)

    # Training-mode BN batch stats from the already-transposed buffer.
    # Centered variance (two-pass) to avoid E[x^2]-E[x]^2 cancellation.
    mean = jnp.mean(x_cr, axis=1)
    var = jnp.mean((x_cr - mean[:, None]) ** 2, axis=1)
    scale = gamma.astype(jnp.float32) * jax.lax.rsqrt(var + EPS)
    bias = beta.astype(jnp.float32) - mean * scale

    # conv_w OIHW = (Cout, Cin, 1, KW) -> tap-major (KW, Cout, Cin)
    w_taps = jnp.transpose(conv_w[:, :, 0, :], (2, 0, 1)).astype(jnp.float32)

    tile_r, r_pad = _pick_tile(r, w)
    if r_pad > r:
        x_cr = jnp.pad(x_cr, ((0, 0), (0, r_pad - r)))
    grid = (r_pad // tile_r,)

    out_cr = pl.pallas_call(
        functools.partial(basic_block_kernel, img_w=w),
        out_shape=jax.ShapeDtypeStruct((cin + cout, r_pad), x_nchw.dtype),
        grid=grid,
        in_specs=[
            pl.BlockSpec((cin, tile_r), lambda i: (0, i)),
            pl.BlockSpec((cin, 1), lambda i: (0, 0)),
            pl.BlockSpec((cin, 1), lambda i: (0, 0)),
            pl.BlockSpec((KW, cout, cin), lambda i: (0, 0, 0)),
            pl.BlockSpec((cout, 1), lambda i: (0, 0)),
        ],
        out_specs=pl.BlockSpec((cin + cout, tile_r), lambda i: (0, i)),
        compiler_params=pltpu.CompilerParams(
            dimension_semantics=("parallel",),            # megacore on v7x
            vmem_limit_bytes=48 * 1024 * 1024,            # <= v7x 64 MiB physical
        ),
        cost_estimate=pl.CostEstimate(
            flops=2 * r_pad * KW * cin * cout + 4 * r_pad * cin,
            transcendentals=0,
            bytes_accessed=4 * r_pad * (2 * cin + cout),
        ),
    )(
        x_cr,
        scale.reshape(cin, 1),
        bias.reshape(cin, 1),
        w_taps,
        conv_b.astype(jnp.float32).reshape(cout, 1),
    )

    out_nchw = jnp.transpose(out_cr[:, :r].reshape(cin + cout, n, h, w),
                             (1, 0, 2, 3))
    return out_nchw


def reference_forward(x, gamma, beta, conv_w, conv_b):
    """Pure-JAX reference matching PyTorch semantics (training-mode BN)."""
    mean = x.mean(axis=(0, 2, 3), keepdims=True)
    var = ((x - mean) ** 2).mean(axis=(0, 2, 3), keepdims=True)
    xn = (x - mean) / jnp.sqrt(var + EPS) * gamma.reshape(1, -1, 1, 1) \
         + beta.reshape(1, -1, 1, 1)
    xn = jnp.maximum(xn, 0.0)
    out = jax.lax.conv_general_dilated(
        xn, conv_w, window_strides=(1, 1), padding=((0, 0), (PAD, PAD)),
        dimension_numbers=("NCHW", "OIHW", "NCHW"),
    ) + conv_b.reshape(1, -1, 1, 1)
    return jnp.concatenate([x, out], axis=1)


if __name__ == "__main__":
    N, C_IN, H, W = 2, 4, 16, 16
    GROW_RATE = 4

    key = jax.random.PRNGKey(0)
    kx, kw, kb = jax.random.split(key, 3)

    # Non-zero-mean input to exercise the centered-variance path.
    x = jax.random.normal(kx, (N, C_IN, H, W), dtype=jnp.float32) + 3.0

    gamma = jnp.ones((C_IN,), jnp.float32)
    beta = jnp.zeros((C_IN,), jnp.float32)
    conv_w = 0.1 * jax.random.normal(kw, (GROW_RATE, C_IN, 1, KW), dtype=jnp.float32)
    conv_b = 0.1 * jax.random.normal(kb, (GROW_RATE,), dtype=jnp.float32)

    out = jax.block_until_ready(basic_block_forward(x, gamma, beta, conv_w, conv_b))
    assert out.shape == (N, C_IN + GROW_RATE, H, W), out.shape

    ref = jax.block_until_ready(reference_forward(x, gamma, beta, conv_w, conv_b))
    assert jnp.allclose(out, ref, atol=1e-4, rtol=1e-4), \
        float(jnp.max(jnp.abs(out - ref)))

    print("KERNEL_OK")
</pallas_src>

<mosaic_0001>
module attributes {stable_mosaic.version = 11 : i64} {
  func.func @basic_block_kernel(%arg0: i32, %arg1: memref<4x128xf32, #tpu.memory_space<vmem>>, %arg2: memref<4x1xf32, #tpu.memory_space<vmem>>, %arg3: memref<4x1xf32, #tpu.memory_space<vmem>>, %arg4: memref<9x4x4xf32, #tpu.memory_space<vmem>>, %arg5: memref<4x1xf32, #tpu.memory_space<vmem>>, %arg6: memref<8x128xf32, #tpu.memory_space<vmem>>) attributes {dimension_semantics = [#tpu.dimension_semantics<parallel>], iteration_bounds = array<i64: 4>, scalar_prefetch = 0 : i64, scratch_operands = 0 : i64, tpu.core_type = #tpu.core_type<tc>, window_params = [{transform_indices = @transform_0, window_bounds = array<i64: 4, 128>}, {pipeline_mode = #tpu.pipeline_mode<synchronous>, transform_indices = @transform_1, window_bounds = array<i64: 4, 1>}, {pipeline_mode = #tpu.pipeline_mode<synchronous>, transform_indices = @transform_2, window_bounds = array<i64: 4, 1>}, {pipeline_mode = #tpu.pipeline_mode<synchronous>, transform_indices = @transform_3, window_bounds = array<i64: 9, 4, 4>}, {pipeline_mode = #tpu.pipeline_mode<synchronous>, transform_indices = @transform_4, window_bounds = array<i64: 4, 1>}, {transform_indices = @transform_5, window_bounds = array<i64: 8, 128>}]} {
    %c0 = arith.constant 0 : index
    %c0_0 = arith.constant 0 : index
    %0 = vector.load %arg1[%c0, %c0_0] : memref<4x128xf32, #tpu.memory_space<vmem>>, vector<4x128xf32>
    %c0_1 = arith.constant 0 : index
    %c0_2 = arith.constant 0 : index
    %1 = vector.load %arg2[%c0_1, %c0_2] : memref<4x1xf32, #tpu.memory_space<vmem>>, vector<4x1xf32>
    %2 = vector.broadcast %1 : vector<4x1xf32> to vector<4x128xf32>
    %3 = arith.mulf %0, %2 : vector<4x128xf32>
    %c0_3 = arith.constant 0 : index
    %c0_4 = arith.constant 0 : index
    %4 = vector.load %arg3[%c0_3, %c0_4] : memref<4x1xf32, #tpu.memory_space<vmem>>, vector<4x1xf32>
    %5 = vector.broadcast %4 : vector<4x1xf32> to vector<4x128xf32>
    %6 = arith.addf %3, %5 : vector<4x128xf32>
    %cst = arith.constant 0.000000e+00 : f32
    %7 = vector.broadcast %cst : f32 to vector<4x128xf32>
    %8 = arith.maximumf %6, %7 : vector<4x128xf32>
    %9 = tpu.iota {dimensions = array<i32: 1>} : vector<1x128xi32>
    %c16_i32 = arith.constant 16 : i32
    %c0_i32 = arith.constant 0 : i32
    %10 = arith.cmpi eq, %c16_i32, %c0_i32 : i32
    %c1_i32 = arith.constant 1 : i32
    %11 = arith.select %10, %c1_i32, %c16_i32 : i32
    %12 = vector.broadcast %11 : i32 to vector<1x128xi32>
    %13 = arith.remsi %9, %12 : vector<1x128xi32>
    %c0_i32_5 = arith.constant 0 : i32
    %14 = vector.broadcast %c0_i32_5 : i32 to vector<1x128xi32>
    %15 = arith.cmpi ne, %13, %14 : vector<1x128xi32>
    %c0_i32_6 = arith.constant 0 : i32
    %16 = vector.broadcast %c0_i32_6 : i32 to vector<1x128xi32>
    %17 = arith.cmpi slt, %13, %16 : vector<1x128xi32>
    %c0_i32_7 = arith.constant 0 : i32
    %18 = arith.cmpi slt, %11, %c0_i32_7 : i32
    %19 = vector.broadcast %18 : i1 to vector<1x128xi1>
    %20 = vector.broadcast %19 : vector<1x128xi1> to vector<1x128xi1>
    %21 = arith.xori %17, %20 : vector<1x128xi1>
    %22 = arith.andi %21, %15 : vector<1x128xi1>
    %23 = vector.broadcast %11 : i32 to vector<1x128xi32>
    %24 = arith.addi %13, %23 : vector<1x128xi32>
    %25 = arith.select %22, %24, %13 : vector<1x128xi1>, vector<1x128xi32>
    %cst_8 = arith.constant 0.000000e+00 : f32
    %26 = vector.broadcast %cst_8 : f32 to vector<4x128xf32>
    %c4_i32 = arith.constant 4 : i32
    %27 = tpu.dynamic_rotate %8 by %c4_i32 dim 1 : vector<4x128xf32>, i32 -> vector<4x128xf32>
    %c4_i32_9 = arith.constant 4 : i32
    %28 = vector.broadcast %c4_i32_9 : i32 to vector<1x128xi32>
    %29 = arith.cmpi sge, %25, %28 : vector<1x128xi32>
    %cst_10 = arith.constant 0.000000e+00 : f32
    %30 = vector.shape_cast %29 : vector<1x128xi1> to vector<1x128xi1>
    %31 = vector.broadcast %30 : vector<1x128xi1> to vector<4x128xi1>
    %32 = vector.broadcast %cst_10 : f32 to vector<4x128xf32>
    %33 = arith.select %31, %27, %32 : vector<4x128xi1>, vector<4x128xf32>
    %c0_11 = arith.constant 0 : index
    %c0_12 = arith.constant 0 : index
    %c0_13 = arith.constant 0 : index
    %34 = vector.load %arg4[%c0_11, %c0_12, %c0_13] : memref<9x4x4xf32, #tpu.memory_space<vmem>>, vector<1x4x4xf32>
    %35 = vector.shape_cast %34 : vector<1x4x4xf32> to vector<4x4xf32>
    %cst_14 = arith.constant dense<0.000000e+00> : vector<4x128xf32>
    %36 = tpu.matmul %35, %33, %cst_14 {dimension_numbers = #tpu.dot_dimension_numbers<[1], [0], [0], [1], [0, 0, 1, 1], [], []>} : vector<4x4xf32>, vector<4x128xf32>, vector<4x128xf32> -> vector<4x128xf32>
    %37 = arith.addf %26, %36 : vector<4x128xf32>
    %c3_i32 = arith.constant 3 : i32
    %38 = tpu.dynamic_rotate %8 by %c3_i32 dim 1 : vector<4x128xf32>, i32 -> vector<4x128xf32>
    %c3_i32_15 = arith.constant 3 : i32
    %39 = vector.broadcast %c3_i32_15 : i32 to vector<1x128xi32>
    %40 = arith.cmpi sge, %25, %39 : vector<1x128xi32>
    %cst_16 = arith.constant 0.000000e+00 : f32
    %41 = vector.shape_cast %40 : vector<1x128xi1> to vector<1x128xi1>
    %42 = vector.broadcast %41 : vector<1x128xi1> to vector<4x128xi1>
    %43 = vector.broadcast %cst_16 : f32 to vector<4x128xf32>
    %44 = arith.select %42, %38, %43 : vector<4x128xi1>, vector<4x128xf32>
    %c1 = arith.constant 1 : index
    %c0_17 = arith.constant 0 : index
    %c0_18 = arith.constant 0 : index
    %45 = vector.load %arg4[%c1, %c0_17, %c0_18] : memref<9x4x4xf32, #tpu.memory_space<vmem>>, vector<1x4x4xf32>
    %46 = vector.shape_cast %45 : vector<1x4x4xf32> to vector<4x4xf32>
    %cst_19 = arith.constant dense<0.000000e+00> : vector<4x128xf32>
    %47 = tpu.matmul %46, %44, %cst_19 {dimension_numbers = #tpu.dot_dimension_numbers<[1], [0], [0], [1], [0, 0, 1, 1], [], []>} : vector<4x4xf32>, vector<4x128xf32>, vector<4x128xf32> -> vector<4x128xf32>
    %48 = arith.addf %37, %47 : vector<4x128xf32>
    %c2_i32 = arith.constant 2 : i32
    %49 = tpu.dynamic_rotate %8 by %c2_i32 dim 1 : vector<4x128xf32>, i32 -> vector<4x128xf32>
    %c2_i32_20 = arith.constant 2 : i32
    %50 = vector.broadcast %c2_i32_20 : i32 to vector<1x128xi32>
    %51 = arith.cmpi sge, %25, %50 : vector<1x128xi32>
    %cst_21 = arith.constant 0.000000e+00 : f32
    %52 = vector.shape_cast %51 : vector<1x128xi1> to vector<1x128xi1>
    %53 = vector.broadcast %52 : vector<1x128xi1> to vector<4x128xi1>
    %54 = vector.broadcast %cst_21 : f32 to vector<4x128xf32>
    %55 = arith.select %53, %49, %54 : vector<4x128xi1>, vector<4x128xf32>
    %c2 = arith.constant 2 : index
    %c0_22 = arith.constant 0 : index
    %c0_23 = arith.constant 0 : index
    %56 = vector.load %arg4[%c2, %c0_22, %c0_23] : memref<9x4x4xf32, #tpu.memory_space<vmem>>, vector<1x4x4xf32>
    %57 = vector.shape_cast %56 : vector<1x4x4xf32> to vector<4x4xf32>
    %cst_24 = arith.constant dense<0.000000e+00> : vector<4x128xf32>
    %58 = tpu.matmul %57, %55, %cst_24 {dimension_numbers = #tpu.dot_dimension_numbers<[1], [0], [0], [1], [0, 0, 1, 1], [], []>} : vector<4x4xf32>, vector<4x128xf32>, vector<4x128xf32> -> vector<4x128xf32>
    %59 = arith.addf %48, %58 : vector<4x128xf32>
    %c1_i32_25 = arith.constant 1 : i32
    %60 = tpu.dynamic_rotate %8 by %c1_i32_25 dim 1 : vector<4x128xf32>, i32 -> vector<4x128xf32>
    %c1_i32_26 = arith.constant 1 : i32
    %61 = vector.broadcast %c1_i32_26 : i32 to vector<1x128xi32>
    %62 = arith.cmpi sge, %25, %61 : vector<1x128xi32>
    %cst_27 = arith.constant 0.000000e+00 : f32
    %63 = vector.shape_cast %62 : vector<1x128xi1> to vector<1x128xi1>
    %64 = vector.broadcast %63 : vector<1x128xi1> to vector<4x128xi1>
    %65 = vector.broadcast %cst_27 : f32 to vector<4x128xf32>
    %66 = arith.select %64, %60, %65 : vector<4x128xi1>, vector<4x128xf32>
    %c3 = arith.constant 3 : index
    %c0_28 = arith.constant 0 : index
    %c0_29 = arith.constant 0 : index
    %67 = vector.load %arg4[%c3, %c0_28, %c0_29] : memref<9x4x4xf32, #tpu.memory_space<vmem>>, vector<1x4x4xf32>
    %68 = vector.shape_cast %67 : vector<1x4x4xf32> to vector<4x4xf32>
    %cst_30 = arith.constant dense<0.000000e+00> : vector<4x128xf32>
    %69 = tpu.matmul %68, %66, %cst_30 {dimension_numbers = #tpu.dot_dimension_numbers<[1], [0], [0], [1], [0, 0, 1, 1], [], []>} : vector<4x4xf32>, vector<4x128xf32>, vector<4x128xf32> -> vector<4x128xf32>
    %70 = arith.addf %59, %69 : vector<4x128xf32>
    %c4 = arith.constant 4 : index
    %c0_31 = arith.constant 0 : index
    %c0_32 = arith.constant 0 : index
    %71 = vector.load %arg4[%c4, %c0_31, %c0_32] : memref<9x4x4xf32, #tpu.memory_space<vmem>>, vector<1x4x4xf32>
    %72 = vector.shape_cast %71 : vector<1x4x4xf32> to vector<4x4xf32>
    %cst_33 = arith.constant dense<0.000000e+00> : vector<4x128xf32>
    %73 = tpu.matmul %72, %8, %cst_33 {dimension_numbers = #tpu.dot_dimension_numbers<[1], [0], [0], [1], [0, 0, 1, 1], [], []>} : vector<4x4xf32>, vector<4x128xf32>, vector<4x128xf32> -> vector<4x128xf32>
    %74 = arith.addf %70, %73 : vector<4x128xf32>
    %c127_i32 = arith.constant 127 : i32
    %75 = tpu.dynamic_rotate %8 by %c127_i32 dim 1 : vector<4x128xf32>, i32 -> vector<4x128xf32>
    %c15_i32 = arith.constant 15 : i32
    %76 = vector.broadcast %c15_i32 : i32 to vector<1x128xi32>
    %77 = arith.cmpi slt, %25, %76 : vector<1x128xi32>
    %cst_34 = arith.constant 0.000000e+00 : f32
    %78 = vector.shape_cast %77 : vector<1x128xi1> to vector<1x128xi1>
    %79 = vector.broadcast %78 : vector<1x128xi1> to vector<4x128xi1>
    %80 = vector.broadcast %cst_34 : f32 to vector<4x128xf32>
    %81 = arith.select %79, %75, %80 : vector<4x128xi1>, vector<4x128xf32>
    %c5 = arith.constant 5 : index
    %c0_35 = arith.constant 0 : index
    %c0_36 = arith.constant 0 : index
    %82 = vector.load %arg4[%c5, %c0_35, %c0_36] : memref<9x4x4xf32, #tpu.memory_space<vmem>>, vector<1x4x4xf32>
    %83 = vector.shape_cast %82 : vector<1x4x4xf32> to vector<4x4xf32>
    %cst_37 = arith.constant dense<0.000000e+00> : vector<4x128xf32>
    %84 = tpu.matmul %83, %81, %cst_37 {dimension_numbers = #tpu.dot_dimension_numbers<[1], [0], [0], [1], [0, 0, 1, 1], [], []>} : vector<4x4xf32>, vector<4x128xf32>, vector<4x128xf32> -> vector<4x128xf32>
    %85 = arith.addf %74, %84 : vector<4x128xf32>
    %c126_i32 = arith.constant 126 : i32
    %86 = tpu.dynamic_rotate %8 by %c126_i32 dim 1 : vector<4x128xf32>, i32 -> vector<4x128xf32>
    %c14_i32 = arith.constant 14 : i32
    %87 = vector.broadcast %c14_i32 : i32 to vector<1x128xi32>
    %88 = arith.cmpi slt, %25, %87 : vector<1x128xi32>
    %cst_38 = arith.constant 0.000000e+00 : f32
    %89 = vector.shape_cast %88 : vector<1x128xi1> to vector<1x128xi1>
    %90 = vector.broadcast %89 : vector<1x128xi1> to vector<4x128xi1>
    %91 = vector.broadcast %cst_38 : f32 to vector<4x128xf32>
    %92 = arith.select %90, %86, %91 : vector<4x128xi1>, vector<4x128xf32>
    %c6 = arith.constant 6 : index
    %c0_39 = arith.constant 0 : index
    %c0_40 = arith.constant 0 : index
    %93 = vector.load %arg4[%c6, %c0_39, %c0_40] : memref<9x4x4xf32, #tpu.memory_space<vmem>>, vector<1x4x4xf32>
    %94 = vector.shape_cast %93 : vector<1x4x4xf32> to vector<4x4xf32>
    %cst_41 = arith.constant dense<0.000000e+00> : vector<4x128xf32>
    %95 = tpu.matmul %94, %92, %cst_41 {dimension_numbers = #tpu.dot_dimension_numbers<[1], [0], [0], [1], [0, 0, 1, 1], [], []>} : vector<4x4xf32>, vector<4x128xf32>, vector<4x128xf32> -> vector<4x128xf32>
    %96 = arith.addf %85, %95 : vector<4x128xf32>
    %c125_i32 = arith.constant 125 : i32
    %97 = tpu.dynamic_rotate %8 by %c125_i32 dim 1 : vector<4x128xf32>, i32 -> vector<4x128xf32>
    %c13_i32 = arith.constant 13 : i32
    %98 = vector.broadcast %c13_i32 : i32 to vector<1x128xi32>
    %99 = arith.cmpi slt, %25, %98 : vector<1x128xi32>
    %cst_42 = arith.constant 0.000000e+00 : f32
    %100 = vector.shape_cast %99 : vector<1x128xi1> to vector<1x128xi1>
    %101 = vector.broadcast %100 : vector<1x128xi1> to vector<4x128xi1>
    %102 = vector.broadcast %cst_42 : f32 to vector<4x128xf32>
    %103 = arith.select %101, %97, %102 : vector<4x128xi1>, vector<4x128xf32>
    %c7 = arith.constant 7 : index
    %c0_43 = arith.constant 0 : index
    %c0_44 = arith.constant 0 : index
    %104 = vector.load %arg4[%c7, %c0_43, %c0_44] : memref<9x4x4xf32, #tpu.memory_space<vmem>>, vector<1x4x4xf32>
    %105 = vector.shape_cast %104 : vector<1x4x4xf32> to vector<4x4xf32>
    %cst_45 = arith.constant dense<0.000000e+00> : vector<4x128xf32>
    %106 = tpu.matmul %105, %103, %cst_45 {dimension_numbers = #tpu.dot_dimension_numbers<[1], [0], [0], [1], [0, 0, 1, 1], [], []>} : vector<4x4xf32>, vector<4x128xf32>, vector<4x128xf32> -> vector<4x128xf32>
    %107 = arith.addf %96, %106 : vector<4x128xf32>
    %c124_i32 = arith.constant 124 : i32
    %108 = tpu.dynamic_rotate %8 by %c124_i32 dim 1 : vector<4x128xf32>, i32 -> vector<4x128xf32>
    %c12_i32 = arith.constant 12 : i32
    %109 = vector.broadcast %c12_i32 : i32 to vector<1x128xi32>
    %110 = arith.cmpi slt, %25, %109 : vector<1x128xi32>
    %cst_46 = arith.constant 0.000000e+00 : f32
    %111 = vector.shape_cast %110 : vector<1x128xi1> to vector<1x128xi1>
    %112 = vector.broadcast %111 : vector<1x128xi1> to vector<4x128xi1>
    %113 = vector.broadcast %cst_46 : f32 to vector<4x128xf32>
    %114 = arith.select %112, %108, %113 : vector<4x128xi1>, vector<4x128xf32>
    %c8 = arith.constant 8 : index
    %c0_47 = arith.constant 0 : index
    %c0_48 = arith.constant 0 : index
    %115 = vector.load %arg4[%c8, %c0_47, %c0_48] : memref<9x4x4xf32, #tpu.memory_space<vmem>>, vector<1x4x4xf32>
    %116 = vector.shape_cast %115 : vector<1x4x4xf32> to vector<4x4xf32>
    %cst_49 = arith.constant dense<0.000000e+00> : vector<4x128xf32>
    %117 = tpu.matmul %116, %114, %cst_49 {dimension_numbers = #tpu.dot_dimension_numbers<[1], [0], [0], [1], [0, 0, 1, 1], [], []>} : vector<4x4xf32>, vector<4x128xf32>, vector<4x128xf32> -> vector<4x128xf32>
    %118 = arith.addf %107, %117 : vector<4x128xf32>
    %c0_50 = arith.constant 0 : index
    %c0_51 = arith.constant 0 : index
    %119 = vector.load %arg5[%c0_50, %c0_51] : memref<4x1xf32, #tpu.memory_space<vmem>>, vector<4x1xf32>
    %120 = vector.broadcast %119 : vector<4x1xf32> to vector<4x128xf32>
    %121 = arith.addf %118, %120 : vector<4x128xf32>
    %122 = tpu.concatenate %0, %121 in 0 : vector<4x128xf32>, vector<4x128xf32> -> vector<8x128xf32>
    %c0_52 = arith.constant 0 : index
    %c0_53 = arith.constant 0 : index
    %123 = vector.load %arg6[%c0_52, %c0_53] : memref<8x128xf32, #tpu.memory_space<vmem>>, vector<8x128xf32>
    tpu.vector_store %arg6[%c0_52, %c0_53], %122 {strides = array<i32>} : memref<8x128xf32, #tpu.memory_space<vmem>>, vector<8x128xf32>,
    return
  }
  func.func @transform_0(%arg0: i32) -> (i32, i32) {
    %c0_i32 = arith.constant 0 : i32
    %c0_i32_0 = arith.constant 0 : i32
    return %c0_i32, %arg0 : i32, i32
  }
  func.func @transform_1(%arg0: i32) -> (i32, i32) {
    %c0_i32 = arith.constant 0 : i32
    %c0_i32_0 = arith.constant 0 : i32
    %c0_i32_1 = arith.constant 0 : i32
    return %c0_i32, %c0_i32_0 : i32, i32
  }
  func.func @transform_2(%arg0: i32) -> (i32, i32) {
    %c0_i32 = arith.constant 0 : i32
    %c0_i32_0 = arith.constant 0 : i32
    %c0_i32_1 = arith.constant 0 : i32
    return %c0_i32, %c0_i32_0 : i32, i32
  }
  func.func @transform_3(%arg0: i32) -> (i32, i32, i32) {
    %c0_i32 = arith.constant 0 : i32
    %c0_i32_0 = arith.constant 0 : i32
    %c0_i32_1 = arith.constant 0 : i32
    %c0_i32_2 = arith.constant 0 : i32
    return %c0_i32, %c0_i32_0, %c0_i32_1 : i32, i32, i32
  }
  func.func @transform_4(%arg0: i32) -> (i32, i32) {
    %c0_i32 = arith.constant 0 : i32
    %c0_i32_0 = arith.constant 0 : i32
    %c0_i32_1 = arith.constant 0 : i32
    return %c0_i32, %c0_i32_0 : i32, i32
  }
  func.func @transform_5(%arg0: i32) -> (i32, i32) {
    %c0_i32 = arith.constant 0 : i32
    %c0_i32_0 = arith.constant 0 : i32
    return %c0_i32, %arg0 : i32, i32
  }
}

</mosaic_0001>

<bundles_post_ra>
// kernel: tpu_custom_call.1
= control target key start
LH: loop header
LB: loop body
LE: loop exit
PB: predicated region body
PF: predicated region fallthrough
CT: control target
= control target key end

     0   :  { %10 = vsyncpa [#allocation3], 0  ;;  %s978_s0 = inlined_call_operand.vmem [shape: f32[4,512], index: 0, kind: input, shape index: {}]   ;;  %s979_s1 = inlined_call_operand.vmem [shape: f32[4,1], index: 1, kind: input, shape index: {}]   ;;  %s980_s2 = inlined_call_operand.vmem [shape: f32[4,1], index: 2, kind: input, shape index: {}]   ;;  %s981_s3 = inlined_call_operand.vmem [shape: f32[9,4,4], index: 3, kind: input, shape index: {}]   ;;  %s982_s4 = inlined_call_operand.vmem [shape: f32[4,1], index: 4, kind: input, shape index: {}]   ;;  %s983_s5 = inlined_call_operand.hbm [shape: f32[8,512], index: 5, kind: output, shape index: {}]  }
   0x1   :  { %12 = vsyncpa [#allocation3 + $0x1], 0  ;;  %s834_s18 = smov 0   ;;  %s836_s19 = smov 0  }
   0x2   :  { %s838_s20 = smov 0   ;;  %s840_s21 = smov 0  }
   0x3 LB: > { %s855_s22 = sadd.s32 4294967295, %s793_s21   ;;  %s645_s23 = sadd.s32 4294967294, %s793_s21   ;;  %s793_s21 = sphi %s840_s21, %s989_s21   ;;  %s789_s20 = sphi %s838_s20, %s988_s20   ;;  %s785_s19 = sphi %s836_s19, %s987_s19   ;;  %s781_s18 = sphi %s834_s18, %s986_s18  }
   0x4   : > { %s859_s24 = sadd.s32 1, %s793_s21   ;;  %s135_s25 = sadd.s32 1, %s789_s20 }
   0x5   : > { %s132_s26 = ssub.s32 %s793_s21, %s859_s24  ;;  %p145_p0 = scmp.ne.s32.totalorder %s789_s20, %s785_s19 }
   0x6   : > { %p133_p1 = scmp.eq.s32.totalorder %s132_s26, 0  ;;  %p146_p2 = scmp.eq.s32.totalorder %s855_s22, 3 }
   0x7   : > { %p151_p3 = scmp.ne.s32.totalorder %s785_s19, %s781_s18  ;;  %p152_p4 = scmp.eq.s32.totalorder %s645_s23, 3 }
   0x8   : > { %s870_s27 = scalar_select %p133_p1, %s789_s20, %s135_s25  }
   0x9   : > { %p872_p5 = por %p146_p2, %p145_p0  ;;  %p876_p6 = por %p152_p4, %p151_p3 }
   0xa   : > { %p648_p7 = scmp.ge.s32.totalorder %s793_s21, 1  ;;  %p189_p8 = scmp.lt.s32.totalorder %s793_s21, 5 }
   0xc   : > { %p190_p9 = pnand %p648_p7, %p189_p8 }
   0xd   : > { %p216_p10 = scmp.lt.s32.totalorder (!%p190_p9), %s855_s22, 3  ;;  %s796_s14 = smov (!%p190_p9), 126  }
   0xe   : > { %193 = sbr.rel (%p190_p9) target bundleno = 426 (0x1aa), region = 40  ;;  %s797_s15 = smov (!%p190_p9), 1  }
   0xf   : > { %s798_s16 = smov (!%p190_p9), 2   ;;  %s799_s17 = smov (!%p190_p9), 124  }
  0x10   : > { %s800_s23 = smov (!%p190_p9), 4   ;;  %s801_s25 = smov (!%p190_p9), 3  }
  0x11   : > { %s802_s26 = smov (!%p190_p9), 127   ;;  %s803_s30 = smov (!%p190_p9), 125  }
  0x12   : > { %s678_s12 = sshll.u32 (!%p190_p9), %s855_s22, 3  ;;  %s751_s7 = scalar_lea.hbm (!%p190_p9), %s983_s5, 32 }
  0x13   : > { %v221_v0 = vld [vmem:[%s979_s1] sm:$0xf]  ;;  %v795_v1 = vmov 0   ;;  %s217_s9 = scalar_select %p216_p10, %s855_s22, 3  ;;  %v236_v9 = vlaneseq  ;;  %vm269_vm1 = vcmask 1043456   ;;  %vm265_vm2 = vcmask 31744  }
  0x14   : > { %729 = vset.pattern.permute.xlu0 %v795_v1  ;;  %730 = vset.pattern.permute.xlu1 %v795_v1  ;;  %v228_v2 = vld [vmem:[%s980_s2] sm:$0xf]  ;;  %v659_v14 = vld [vmem:[%s981_s3 + $0xc] sm:$0xf]  ;;  %v665_v19 = vld [vmem:[%s981_s3 + $0x14] sm:$0xf] }
  0x15   : > { %224 = vperm.xlu0 %729, %v221_v0   ;;  %s650_s10 = sshll.u32 %s217_s9, 2  ;;  %v237_v10 = vand.u32 127, %v236_v9  ;;  %v256_v16 = vld [vmem:[%s981_s3] sm:$0xf]  ;;  %v656_v26 = vld [vmem:[%s981_s3 + $0x8] sm:$0xf] }
  0x16   : > { %s219_s13 = scalar_lea.vmem %s978_s0, %s650_s10  ;;  %v558_v21 = vld [vmem:[%s982_s4] sm:$0xf]  ;;  %v651_v30 = vld [vmem:[%s981_s3 + $0x4] sm:$0xf]  ;;  %v668_v31 = vld [vmem:[%s981_s3 + $0x18] sm:$0xf] }
  0x17   : > { %v893_v4 = vld [vmem:[%s219_s13] sm:$0xf]  ;;  %v242_v11 = vand.u32 15, %v237_v10  ;;  %v671_v34 = vld [vmem:[%s981_s3 + $0x1c] sm:$0xf]  ;;  %s213_s10 = sand.u32 1, %s785_s19  }
  0x18   : > { %v662_v36 = vld [vmem:[%s981_s3 + $0x10] sm:$0xf]  ;;  %v674_v37 = vld [vmem:[%s981_s3 + $0x20] sm:$0xf]  ;;  %s649_s11 = sshll.u32 %s213_s10, 3  ;;  %s571_s22 = scalar_lea.sflag [#allocation3], %s213_s10 }
  0x19   : > { %vm356_vm0 = vcmp.ge.s32.totalorder %v242_v11, 1  ;;  %vm252_vm3 = vcmp.ge.s32.totalorder %v242_v11, 4  ;;  %vm420_vm4 = vcmp.lt.s32.totalorder %v242_v11, 15  ;;  %vm455_vm5 = vcmp.lt.s32.totalorder %v242_v11, 14 }
  0x1a   : > { %vm321_vm6 = vcmp.ge.s32.totalorder %v242_v11, 2  ;;  %vm259_vm7 = vcmp.ge.s32.totalorder %v242_v11, 3  ;;  %vm525_vm8 = vcmp.lt.s32.totalorder %v242_v11, 12  ;;  %vm490_vm9 = vcmp.lt.s32.totalorder %v242_v11, 13 }
  0x1d   : > { %231 = vperm.xlu0 %729, %v228_v2  }
  0x87   : > { %v225_v3 = vpop.permute.xlu0 %224 }
  0x88   : > { %v227_v5 = vmul.f32 %v225_v3, %v893_v4 }
  0x8f   : > { %v232_v6 = vpop.permute.xlu0 %231 }
  0x90   : > { %v234_v7 = vadd.f32 %v232_v6, %v227_v5 }
  0x92   : > { %v235_v8 = vmax.f32 %v234_v7, 0.0 }
  0x94   : > { %453 = vrot.lane.b32.xlu0 %v235_v8, %s796_s14  ;;  %354 = vrot.lane.b32.xlu2 %v235_v8, %s797_s15  ;;  %s581_s15 = scalar_lea.hbm %s983_s5, %s678_s12 }
  0x95   : > { %319 = vrot.lane.b32.xlu1 %v235_v8, %s798_s16  ;;  %s215_s16 = scalar_lea.vmem [#allocation2], %s649_s11 }
  0x9c   : > { %523 = vrot.lane.b32.xlu0 %v235_v8, %s799_s17  ;;  %250 = vrot.lane.b32.xlu2 %v235_v8, %s800_s23  ;;  %s583_s17 = sshll.u32 %s215_s16, 4  ;;  %s585_s23 = sshll.u32 %s581_s15, 4  ;;  %s584_s17 = int_to_ptr.vmem [resolvable:$true] %s583_s17  ;;  %s586_s23 = int_to_ptr.hbm [resolvable:$true] %s585_s23 }
  0x9d   : > { %257 = vrot.lane.b32.xlu1 %v235_v8, %s801_s25  ;;  %s745_s25 = sshra.s32 %s586_s23, 4  ;;  %s746_s25 = int_to_ptr.hbm [resolvable:$true] %s745_s25 }
  0x9e   : > { %p752_p0 = scmp.lt.s32.totalorder %s746_s25, %s983_s5 }
  0xa4   : > { %418 = vrot.lane.b32.xlu2 %v235_v8, %s802_s26  ;;  %s747_s26 = scalar_lea.hbm %s746_s25, 8 }
  0xa5   : > { %488 = vrot.lane.b32.xlu1 %v235_v8, %s803_s30  ;;  %p748_p11 = scmp.ne.s32.totalorder %s746_s25, %s747_s26  ;;  %p753_p1 = scmp.lt.s32.totalorder %s751_s7, %s747_s26 }
  0xa7   : > { %p749_p12 = pnand %p748_p11, %p872_p5  ;;  %p754_p2 = por %p753_p1, %p752_p0 }
  0xa9   : > { %p750_p13 = pneg %p749_p12 }
  0xab   : > { %p755_p3 = pnand %p754_p2, %p750_p13 }
  0xad   : > { %561 = vperm.xlu1 %730, %v558_v21  }
  0xee   : > { %v355_v12 = vpop.permute.xlu2 %354 }
  0xef   : > { %v359_v13 = vsel %vm356_vm0, %v355_v12, 0.0 }
  0xf0   : > { %660 = vmatpush.msk.msra.mxu3 %vm269_vm1, %v359_v13 }
  0xf1   : > { %661 = vmatmul.msk.f32.vlgmr.msra.gmra.mxu3 %vm265_vm2, %v659_v14 }
  0xf6   : > { %v251_v15 = vpop.permute.xlu2 %250 }
  0xf7   : > { %v255_v17 = vsel %vm252_vm3, %v251_v15, 0.0 }
  0xf8   : > { %654 = vmatpush.msk.msra.mxu1 %vm269_vm1, %v255_v17 }
  0xf9   : > { %655 = vmatmul.msk.f32.vlgmr.msra.gmra.mxu1 %vm265_vm2, %v256_v16 }
  0xfe   : > { %v419_v18 = vpop.permute.xlu2 %418 }
  0xff   : > { %v423_v20 = vsel %vm420_vm4, %v419_v18, 0.0 }
 0x100   : > { %666 = vmatpush.msk.msrb.mxu1 %vm269_vm1, %v423_v20 }
 0x101   : > { %667 = vmatmul.msk.f32.vlgmr.msrb.gmra.mxu1 %vm265_vm2, %v665_v19 }
 0x106   : > { %v454_v22 = vpop.permute.xlu0 %453 }
 0x107   : > { %v458_v23 = vsel %vm455_vm5, %v454_v22, 0.0  ;;  %v320_v24 = vpop.permute.xlu1 %319 }
 0x108   : > { %v324_v25 = vsel %vm321_vm6, %v320_v24, 0.0 }
 0x109   : > { %657 = vmatpush.msk.msra.mxu2 %vm269_vm1, %v324_v25 }
 0x10a   : > { %658 = vmatmul.msk.f32.vlgmr.msra.gmra.mxu2 %vm265_vm2, %v656_v26 }
 0x10b   : > { %669 = vmatpush.msk.msrb.mxu2 %vm269_vm1, %v458_v23 }
 0x10e   : > { %v524_v28 = vpop.permute.xlu0 %523 }
 0x10f   : > { %v258_v27 = vpop.permute.xlu1 %257  ;;  %v528_v32 = vsel %vm525_vm8, %v524_v28, 0.0 }
 0x110   : > { %v262_v29 = vsel %vm259_vm7, %v258_v27, 0.0 }
 0x111   : > { %652 = vmatpush.msk.msra.mxu0 %vm269_vm1, %v262_v29 }
 0x112   : > { %653 = vmatmul.msk.f32.vlgmr.msra.gmra.mxu0 %vm265_vm2, %v651_v30  ;;  %670 = vmatmul.msk.f32.vlgmr.msrb.gmra.mxu2 %vm265_vm2, %v668_v31 }
 0x113   : > { %663 = vmatpush.msk.msrb.mxu0 %vm269_vm1, %v235_v8 }
 0x115   : > { %675 = vmatpush.msk.msra.mxu0 %vm269_vm1, %v528_v32 }
 0x117   : > { %v489_v33 = vpop.permute.xlu1 %488 }
 0x118   : > { %v493_v35 = vsel %vm490_vm9, %v489_v33, 0.0 }
 0x119   : > { %672 = vmatpush.msk.msrb.mxu3 %vm269_vm1, %v493_v35 }
 0x11a   : > { %673 = vmatmul.msk.f32.vlgmr.msrb.gmra.mxu3 %vm265_vm2, %v671_v34  ;;  %664 = vmatmul.msk.f32.vlgmr.msrb.gmra.mxu0 %vm265_vm2, %v662_v36 }
 0x11f   : > { %v562_v54 = vpop.permute.xlu1 %561 }
 0x122   : > { %676 = vmatmul.msk.f32.vlgmr.msra.gmra.mxu0 %vm265_vm2, %v674_v37 }
 0x174   : > { %v385_v43 = vpop.f32.mrf.mxu3 }
 0x176   : > { %v316_v38 = vpop.f32.mrf.mxu1 }
 0x17e   : > { %v449_v46 = vpop.f32.mrf.mxu1 }
 0x18d   : > { %v350_v40 = vpop.f32.mrf.mxu2 }
 0x18f   : > { %v290_v39 = vpop.f32.mrf.mxu0 }
 0x190   : > { %v317_v41 = vadd.f32 %v316_v38, %v290_v39 }
 0x192   : > { %v353_v42 = vadd.f32 %v350_v40, %v317_v41 }
 0x194   : > { %v388_v44 = vadd.f32 %v385_v43, %v353_v42 }
 0x195   : > { %v484_v48 = vpop.f32.mrf.mxu2 }
 0x197   : > { %v414_v45 = vpop.f32.mrf.mxu0 }
 0x198   : > { %v417_v47 = vadd.f32 %v414_v45, %v388_v44 }
 0x19a   : > { %v452_v49 = vadd.f32 %v449_v46, %v417_v47 }
 0x19c   : > { %v487_v50 = vadd.f32 %v484_v48, %v452_v49 }
 0x19d   : > { %v519_v51 = vpop.f32.mrf.mxu3 }
 0x19e   : > { %v522_v52 = vadd.f32 %v519_v51, %v487_v50 }
 0x19f   : > { %v554_v53 = vpop.f32.mrf.mxu0 }
 0x1a0   : > { %v557_v55 = vadd.f32 %v554_v53, %v522_v52 }
 0x1a2   : > { %v564_v56 = vadd.f32 %v562_v54, %v557_v55 }
 0x1a4   : > { %v566_v57 = vrot.slane %v564_v56, 4 }
 0x1a6   : > { %v568_v58 = vsel %vm269_vm1, %v893_v4, %v566_v57 }
 0x1a7   : > { %569 = vst [vmem:[%s215_s16] sm:$0xff] %v568_v58 }
 0x1a8   : > { %758 = shalt.err (!%p755_p3)
}
 0x1a9   : > { %681 = dma.vmem_to_hbm [thread:$0]  (%p872_p5), %s584_s17, 128, %s586_s23, %s571_s22  }
 0x1aa PF: > { %p687_p4 = scmp.ge.s32.totalorder %s793_s21, 2  ;;  %s597_s10 = sand.u32 1, %s781_s18  }
 0x1ab   : > { %s598_s11 = scalar_lea.sflag [#allocation3], %s597_s10 }
 0x1ac   : > { %p684_p7 = pnand %p687_p4, %p876_p6 }
 0x1ae   : > { %p685_p8 = pneg %p684_p7 }
 0x1b0   : > { %776 = dma.done.wait (%p685_p8), %s598_s11, 128  }
 0x1b1   : > { %778 = vsyncadd (%p685_p8), %s598_s11, 4294967168  ;;  %p15_p9 = scmp.ge.s32.totalorder %s859_s24, 6   ;;  %s986_s18 = smov %s785_s19 }
 0x1b2   : > { %s987_s19 = smov %s789_s20  ;;  %s988_s20 = smov %s870_s27 }
 0x1b3   : > { %s989_s21 = smov %s859_s24  ;;  %17 = sbr.rel (!%p15_p9) target bundleno = 3 (0x3), region = 83 }
 0x1b8   :  { %604 = vsyncpa [#allocation3], 1 }
 0x1b9   :  { %606 = vsyncpa [#allocation3 + $0x1], 1 }

</bundles_post_ra>
